<compile_context>
chip_gen: v7x
topology: tpu7x:2x2x1
jax: 0.10.0
libtpu: 0.0.40
codegen_flags: <defaults>
</compile_context>

<pallas_src>
import functools

import jax
import jax.numpy as jnp
from jax import lax
from jax.experimental import pallas as pl
from jax.experimental.pallas import tpu as pltpu

_NEG_LARGE = -1e30     # finite "minus infinity" so 0 * _NEG_LARGE == 0
_SMALL_K = 8           # exact masked-max loop up to here; threshold search beyond
_BISECT_ITERS = 24     # binary-search steps for the k-th-largest threshold


def _elementwise_loss(p, t):
    # BCEWithLogitsLoss, reduction='none' (numerically stable form):
    #   loss = max(p, 0) - p*t + log(1 + exp(-|p|))
    return jnp.maximum(p, 0.0) - p * t + jnp.log1p(jnp.exp(-jnp.abs(p)))


def _hard_neg_kernel(pred_ref, true_ref, out_ref, *, k):
    p = pred_ref[...].astype(jnp.float32)
    t = true_ref[...].astype(jnp.float32)
    raw = _elementwise_loss(p, t)                       # (TB, N) raw_loss tile
    TB, _ = raw.shape

    if k <= _SMALL_K:
        # Exact top-k: at most k iterations of row-max knockout.  Each
        # iteration removes ALL elements tied at the row max and credits
        # m * min(n_ties, remaining) to the accumulator -> no iota tile, no
        # index-min reduction, still exact.
        def body(_, carry):
            acc, cur, remaining = carry
            m = jnp.max(cur, axis=-1, keepdims=True)                    # (TB,1)
            is_max = cur == m                                           # (TB,N)
            n_ties = jnp.sum(is_max.astype(jnp.float32), axis=-1, keepdims=True)
            take = jnp.minimum(n_ties, remaining)
            acc = acc + m * take
            remaining = remaining - take
            cur = jnp.where(is_max, _NEG_LARGE, cur)
            return acc, cur, remaining

        acc, _, _ = lax.fori_loop(
            0, k, body,
            (jnp.zeros((TB, 1), jnp.float32),
             raw,
             jnp.full((TB, 1), float(k), jnp.float32)),
            unroll=(k <= 4))
        out_ref[...] = acc                              # per-row sum of top-k
    else:
        # Large k: binary-search the k-th-largest value per row (count_ge is
        # monotone in the threshold), then a thresholded sum.  ~26 full-tile
        # passes total, independent of k.
        lo = jnp.min(raw, axis=-1, keepdims=True)       # count_ge(lo) = N >= k
        hi = jnp.max(raw, axis=-1, keepdims=True)       # hi >= v_k

        def bisect(_, carry):
            lo, hi = carry
            mid = 0.5 * (lo + hi)
            cnt = jnp.sum((raw >= mid).astype(jnp.float32), axis=-1, keepdims=True)
            ge_k = cnt >= k
            return jnp.where(ge_k, mid, lo), jnp.where(ge_k, hi, mid)

        lo, _ = lax.fori_loop(0, _BISECT_ITERS, bisect, (lo, hi))
        thr = lo                                        # ~= k-th largest value
        gt = raw > thr
        cnt_gt = jnp.sum(gt.astype(jnp.float32), axis=-1, keepdims=True)
        sum_gt = jnp.sum(jnp.where(gt, raw, 0.0), axis=-1, keepdims=True)
        # pad/trim with the threshold so exactly k elements contribute
        # (error bounded by the bisect gap; see header notes).
        out_ref[...] = sum_gt + thr * (k - cnt_gt)


def _sublane_multiple(*dtypes):
    # (8,128) min tile for f32, (16,128) for bf16/f16, (32,128) for int8/fp8.
    return max(max(8, 32 // jnp.dtype(d).itemsize) for d in dtypes)


def _choose_row_tile(B, N, dtypes, target_tile_bytes=2 << 20, min_steps=4):
    """Row tile sized by BOTH a ~2 MiB byte budget and a >=min_steps grid,
    rounded to the dtype sublane multiple.  grid = cdiv(B, tb); tail blocks
    are clipped by Pallas (rows are independent, so garbage tail rows are
    harmless and never written back)."""
    sub = _sublane_multiple(*dtypes)
    if B <= sub:
        return B                                    # full-extent dim is always legal
    itemsize = max(jnp.dtype(d).itemsize for d in dtypes)
    tb_bytes = target_tile_bytes // max(1, N * itemsize)
    tb_steps = B // min_steps                       # keep the pipeline/megacore busy
    tb = max(sub, min(int(tb_bytes), int(tb_steps), B))
    return max(sub, (tb // sub) * sub)


def hard_negative_loss(y_pred, y_true, hard_pct=0.02):
    """JAX/Pallas equivalent of HardNegativeWrapper(BCEWithLogitsLoss(reduction='none'))."""
    B, N = y_pred.shape
    k = int(hard_pct * N)            # matches PyTorch's int(...) truncation
    assert 1 <= k <= N, "hard_pct * N must be in [1, N]"

    dtypes = (y_pred.dtype, y_true.dtype)
    tb = _choose_row_tile(B, N, dtypes)
    grid = (pl.cdiv(B, tb),)

    # VMEM budget from the real footprint: 2 inputs x 2 pipeline buffers plus
    # ~6 f32-tile-sized in-kernel intermediates plus slack; clamp to <= 32 MiB
    # so it is safe on every generation (v7x has 64 MiB physical per TC).
    in_tile_bytes = tb * N * sum(jnp.dtype(d).itemsize for d in dtypes)
    f32_tile_bytes = tb * N * 4
    vmem_needed = 2 * in_tile_bytes + 6 * f32_tile_bytes + (4 << 20)
    vmem_limit = int(min(max(vmem_needed, 16 << 20), 32 << 20))

    topk_sum = pl.pallas_call(
        functools.partial(_hard_neg_kernel, k=k),
        out_shape=jax.ShapeDtypeStruct((B, 1), jnp.float32),
        grid=grid,
        in_specs=[
            pl.BlockSpec((tb, N), lambda i: (i, 0)),
            pl.BlockSpec((tb, N), lambda i: (i, 0)),
        ],
        out_specs=pl.BlockSpec((tb, 1), lambda i: (i, 0)),
        compiler_params=pltpu.CompilerParams(
            dimension_semantics=("parallel",),      # megacore-shard batch on v7x
            vmem_limit_bytes=vmem_limit,
        ),
    )(y_pred, y_true)

    # hard_loss = topk_values.mean(); the trailing .mean() is a no-op on a scalar.
    # TODO(synk): tiny (B,1)->scalar reduction stays in plain XLA; negligible cost.
    return jnp.sum(topk_sum) / (B * k)


def _reference(y_pred, y_true, hard_pct=0.02):
    # Pure-JAX reference mirroring the PyTorch semantics.
    raw = _elementwise_loss(y_pred.astype(jnp.float32), y_true.astype(jnp.float32))
    k = int(hard_pct * raw.shape[1])
    return lax.top_k(raw, k)[0].mean()


if __name__ == "__main__":
    key = jax.random.PRNGKey(0)
    k1, k2 = jax.random.split(key)

    # Case 1: small k -> exact masked-max path (k = int(0.02*256) = 5), f32.
    yp1 = jax.random.normal(k1, (8, 256), dtype=jnp.float32)
    yt1 = jax.random.bernoulli(k2, 0.5, (8, 256)).astype(jnp.float32)
    out1 = jax.block_until_ready(hard_negative_loss(yp1, yt1, hard_pct=0.02))
    ref1 = _reference(yp1, yt1, hard_pct=0.02)
    assert jnp.allclose(out1, ref1, rtol=1e-4, atol=1e-5), (out1, ref1)

    # Case 2: larger k -> threshold / binary-search path (k = int(0.05*1024) = 51), f32.
    k3, k4 = jax.random.split(k1)
    yp2 = jax.random.normal(k3, (16, 1024), dtype=jnp.float32)
    yt2 = jax.random.bernoulli(k4, 0.5, (16, 1024)).astype(jnp.float32)
    out2 = jax.block_until_ready(hard_negative_loss(yp2, yt2, hard_pct=0.05))
    ref2 = _reference(yp2, yt2, hard_pct=0.05)
    assert jnp.allclose(out2, ref2, rtol=1e-4, atol=1e-5), (out2, ref2)

    # Case 3: bf16 inputs, B not a multiple of the tile -> exercises the bf16
    # sublane rounding and the cdiv tail block (k = int(0.02*512) = 10 -> bisect).
    k5, k6 = jax.random.split(k2)
    yp3 = jax.random.normal(k5, (24, 512), dtype=jnp.bfloat16)
    yt3 = jax.random.bernoulli(k6, 0.5, (24, 512)).astype(jnp.bfloat16)
    out3 = jax.block_until_ready(hard_negative_loss(yp3, yt3, hard_pct=0.02))
    ref3 = _reference(yp3, yt3, hard_pct=0.02)
    assert jnp.allclose(out3, ref3, rtol=1e-4, atol=1e-5), (out3, ref3)

    print("KERNEL_OK")
</pallas_src>

<mosaic_0001>
module attributes {stable_mosaic.version = 11 : i64} {
  func.func @_hard_neg_kernel(%arg0: i32, %arg1: memref<8x256xf32, #tpu.memory_space<vmem>>, %arg2: memref<8x256xf32, #tpu.memory_space<vmem>>, %arg3: memref<8x1xf32, #tpu.memory_space<vmem>>) attributes {dimension_semantics = [#tpu.dimension_semantics<parallel>], iteration_bounds = array<i64: 1>, scalar_prefetch = 0 : i64, scratch_operands = 0 : i64, tpu.core_type = #tpu.core_type<tc>, window_params = [{transform_indices = @transform_0, window_bounds = array<i64: 8, 256>}, {transform_indices = @transform_1, window_bounds = array<i64: 8, 256>}, {transform_indices = @transform_2, window_bounds = array<i64: 8, 1>}]} {
    %c0 = arith.constant 0 : index
    %c0_0 = arith.constant 0 : index
    %0 = vector.load %arg1[%c0, %c0_0] : memref<8x256xf32, #tpu.memory_space<vmem>>, vector<8x256xf32>
    %c0_1 = arith.constant 0 : index
    %c0_2 = arith.constant 0 : index
    %1 = vector.load %arg2[%c0_1, %c0_2] : memref<8x256xf32, #tpu.memory_space<vmem>>, vector<8x256xf32>
    %cst = arith.constant 0.000000e+00 : f32
    %2 = vector.broadcast %cst : f32 to vector<8x256xf32>
    %3 = arith.maximumf %0, %2 : vector<8x256xf32>
    %4 = arith.mulf %0, %1 : vector<8x256xf32>
    %5 = arith.subf %3, %4 : vector<8x256xf32>
    %6 = math.absf %0 : vector<8x256xf32>
    %cst_3 = arith.constant 0.000000e+00 : f32
    %7 = vector.broadcast %cst_3 : f32 to vector<8x256xf32>
    %8 = arith.subf %7, %6 : vector<8x256xf32>
    %9 = math.exp %8 : vector<8x256xf32>
    %10 = math.log1p %9 : vector<8x256xf32>
    %11 = arith.addf %5, %10 : vector<8x256xf32>
    %cst_4 = arith.constant 0.000000e+00 : f32
    %12 = vector.broadcast %cst_4 : f32 to vector<8x1xf32>
    %cst_5 = arith.constant 5.000000e+00 : f32
    %13 = vector.broadcast %cst_5 : f32 to vector<8x1xf32>
    %c0_i32 = arith.constant 0 : i32
    %c5_i32 = arith.constant 5 : i32
    %14 = arith.addi %c0_i32, %c5_i32 : i32
    %c1_i32 = arith.constant 1 : i32
    %15:3 = scf.for %arg4 = %c0_i32 to %14 step %c1_i32 iter_args(%arg5 = %12, %arg6 = %11, %arg7 = %13) -> (vector<8x1xf32>, vector<8x256xf32>, vector<8x1xf32>)  : i32 {
      %cst_8 = arith.constant dense<0xFF800000> : vector<8xf32>
      %17 = vector.multi_reduction <maximumf>, %arg6, %cst_8 [1] : vector<8x256xf32> to vector<8xf32>
      %18 = vector.shape_cast %17 : vector<8xf32> to vector<8x1xf32>
      %19 = vector.broadcast %18 : vector<8x1xf32> to vector<8x256xf32>
      %20 = arith.cmpf oeq, %arg6, %19 : vector<8x256xf32>
      %21 = arith.extui %20 : vector<8x256xi1> to vector<8x256xi32>
      %22 = arith.sitofp %21 : vector<8x256xi32> to vector<8x256xf32>
      %cst_9 = arith.constant dense<0.000000e+00> : vector<8xf32>
      %23 = vector.multi_reduction <add>, %22, %cst_9 [1] : vector<8x256xf32> to vector<8xf32>
      %24 = vector.shape_cast %23 : vector<8xf32> to vector<8x1xf32>
      %25 = arith.minimumf %24, %arg7 : vector<8x1xf32>
      %26 = arith.mulf %18, %25 : vector<8x1xf32>
      %27 = arith.addf %arg5, %26 : vector<8x1xf32>
      %28 = arith.subf %arg7, %25 : vector<8x1xf32>
      %cst_10 = arith.constant -1.000000e+30 : f32
      %29 = vector.broadcast %cst_10 : f32 to vector<8x256xf32>
      %30 = arith.select %20, %29, %arg6 : vector<8x256xi1>, vector<8x256xf32>
      scf.yield %27, %30, %28 : vector<8x1xf32>, vector<8x256xf32>, vector<8x1xf32>
    }
    %c0_6 = arith.constant 0 : index
    %c0_7 = arith.constant 0 : index
    %16 = vector.load %arg3[%c0_6, %c0_7] : memref<8x1xf32, #tpu.memory_space<vmem>>, vector<8x1xf32>
    tpu.vector_store %arg3[%c0_6, %c0_7], %15#0 {strides = array<i32>} : memref<8x1xf32, #tpu.memory_space<vmem>>, vector<8x1xf32>,
    return
  }
  func.func @transform_0(%arg0: i32) -> (i32, i32) {
    %c0_i32 = arith.constant 0 : i32
    %c0_i32_0 = arith.constant 0 : i32
    return %arg0, %c0_i32 : i32, i32
  }
  func.func @transform_1(%arg0: i32) -> (i32, i32) {
    %c0_i32 = arith.constant 0 : i32
    %c0_i32_0 = arith.constant 0 : i32
    return %arg0, %c0_i32 : i32, i32
  }
  func.func @transform_2(%arg0: i32) -> (i32, i32) {
    %c0_i32 = arith.constant 0 : i32
    %c0_i32_0 = arith.constant 0 : i32
    return %arg0, %c0_i32 : i32, i32
  }
}

</mosaic_0001>

<bundles_post_ra>
// kernel: tpu_custom_call.1
= control target key start
LH: loop header
LB: loop body
LE: loop exit
PB: predicated region body
PF: predicated region fallthrough
CT: control target
= control target key end

     0   :  { %7 = vsyncpa [#allocation3], 0  ;;  %s317_s0 = inlined_call_operand.hbm [shape: f32[8,256], index: 0, kind: input, shape index: {}]   ;;  %s318_s1 = inlined_call_operand.hbm [shape: f32[8,256], index: 1, kind: input, shape index: {}]   ;;  %s319_s2 = inlined_call_operand.vmem [shape: f32[8,1], index: 2, kind: output, shape index: {}]  }
   0x1   :  { %8 = vsyncpa [#allocation5], 0  ;;  %s267_s9 = smov [#allocation2]   ;;  %s268_s11 = smov [#allocation4]  }
   0x2   :  { %s15_s10 = sshll.u32 %s267_s9, 4  ;;  %s25_s12 = sshll.u32 %s268_s11, 4  ;;  %s16_s10 = int_to_ptr.vmem [resolvable:$true] %s15_s10  ;;  %s26_s12 = int_to_ptr.vmem [resolvable:$true] %s25_s12 }
   0x3   :  { %s179_s15 = scalar_lea.hbm %s317_s0, 256 }
   0x4   :  { %p180_p0 = scmp.ne.s32.totalorder %s317_s0, %s179_s15  ;;  %p183_p1 = scmp.lt.u32.totalorder %s179_s15, %s317_s0 }
   0x6   :  { %p185_p2 = pnand %p183_p1, %p180_p0 }
   0x8   :  { %188 = shalt.err (!%p185_p2)
}
   0x9   :  { %s189_s20 = scalar_lea.vmem %s16_s10, 256  ;;  %p194_p4 = scmp.lt.s32.totalorder %s16_s10, %s16_s10 }
   0xa   :  { %p190_p3 = scmp.ne.s32.totalorder %s16_s10, %s189_s20  ;;  %p195_p5 = scmp.lt.s32.totalorder %s189_s20, %s189_s20 }
   0xc   :  { %p196_p6 = por %p195_p5, %p194_p4 }
   0xe   :  { %p197_p7 = pnand %p196_p6, %p190_p3 }
  0x10   :  { %200 = shalt.err (!%p197_p7)
}
  0x11   :  { %18 = dma.hbm_to_vmem [thread:$0]  %s317_s0, 256, %s16_s10, [#allocation3]  }
  0x12   :  { %s201_s25 = scalar_lea.hbm %s318_s1, 256 }
  0x13   :  { %p202_p8 = scmp.ne.s32.totalorder %s318_s1, %s201_s25  ;;  %p205_p9 = scmp.lt.u32.totalorder %s201_s25, %s318_s1 }
  0x15   :  { %p207_p10 = pnand %p205_p9, %p202_p8 }
  0x17   :  { %210 = shalt.err (!%p207_p10)
}
  0x18   :  { %s211_s30 = scalar_lea.vmem %s26_s12, 256  ;;  %p216_p12 = scmp.lt.s32.totalorder %s26_s12, %s26_s12 }
  0x19   :  { %p212_p11 = scmp.ne.s32.totalorder %s26_s12, %s211_s30  ;;  %p217_p13 = scmp.lt.s32.totalorder %s211_s30, %s211_s30 }
  0x1b   :  { %p218_p0 = por %p217_p13, %p216_p12 }
  0x1d   :  { %p219_p1 = pnand %p218_p0, %p212_p11 }
  0x1f   :  { %222 = shalt.err (!%p219_p1)
}
  0x20   :  { %28 = dma.hbm_to_vmem [thread:$0]  %s318_s1, 256, %s26_s12, [#allocation5]  }
  0x21   :  { %243 = dma.done.wait [#allocation3], 256  }
  0x22   :  { %244 = vsyncadd [#allocation3], 4294967040 }
  0x23   :  { %245 = dma.done.wait [#allocation5], 256  }
  0x24   :  { %246 = vsyncadd [#allocation5], 4294967040  ;;  %v35_v0 = vld [vmem:[#allocation2] sm:$0xff]  ;;  %v36_v1 = vld [vmem:[#allocation2 + $0x8] sm:$0xff]  ;;  %v247_v36 = vmov 5.0   ;;  %v259_v39 = vmov 0.0  }
  0x25   :  { %v45_v2 = vand.u32 2147483647, %v35_v0  ;;  %v46_v3 = vand.u32 2147483647, %v36_v1  ;;  %v37_v14 = vld [vmem:[#allocation4] sm:$0xff]  ;;  %v38_v15 = vld [vmem:[#allocation4 + $0x8] sm:$0xff] }
  0x26   :  { %v39_v17 = vmax.f32 %v35_v0, 0.0  ;;  %v41_v18 = vmul.f32 %v37_v14, %v35_v0  ;;  %v40_v21 = vmax.f32 %v36_v1, 0.0  ;;  %v42_v22 = vmul.f32 %v38_v15, %v36_v1  ;;  %s309_s1 = smov 0  }
  0x27   :  { %v47_v4 = vsub.f32 0.0, %v45_v2  ;;  %v48_v5 = vsub.f32 0.0, %v46_v3 }
  0x28   :  { %v43_v26 = vsub.f32 %v39_v17, %v41_v18  ;;  %v44_v29 = vsub.f32 %v40_v21, %v42_v22 }
  0x29   :  { %v49_v6 = vmul.f32 1.442695, %v47_v4  ;;  %v51_v7 = vmul.f32 1.442695, %v48_v5 }
  0x2b   :  { %171 = vpow2.f32 %v49_v6 }
  0x2c   :  { %173 = vpow2.f32 %v51_v7 }
  0x35   :  { %v172_v8 = vpop.eup %171 }
  0x36   :  { %v174_v9 = vpop.eup %173  ;;  %v53_v10 = vadd.f32 1.0, %v172_v8  ;;  %v56_v12 = vmul.f32 -0.5, %v172_v8  ;;  %v59_v19 = vand.u32 2147483647, %v172_v8 }
  0x37   :  { %v62_v11 = vadd.f32 1.0, %v174_v9  ;;  %v65_v13 = vmul.f32 -0.5, %v174_v9  ;;  %v68_v23 = vand.u32 2147483647, %v174_v9 }
  0x38   :  { %175 = vlog2.f32 %v53_v10  ;;  %v57_v16 = vadd.f32 1.0, %v56_v12  ;;  %vm60_vm0 = vcmp.lt.f32.partialorder %v59_v19, 0.0004427343 }
  0x39   :  { %177 = vlog2.f32 %v62_v11  ;;  %v66_v20 = vadd.f32 1.0, %v65_v13  ;;  %vm69_vm1 = vcmp.lt.f32.partialorder %v68_v23, 0.0004427343 }
  0x3a   :  { %v58_v24 = vmul.f32 %v172_v8, %v57_v16 }
  0x3b   :  { %v67_v27 = vmul.f32 %v174_v9, %v66_v20 }
  0x42   :  { %v176_v25 = vpop.eup %175 }
  0x43   :  { %v178_v28 = vpop.eup %177  ;;  %v55_v30 = vmul.f32 0.6931472, %v176_v25 }
  0x44   :  { %v64_v31 = vmul.f32 0.6931472, %v178_v28 }
  0x45   :  { %v61_v32 = vsel %vm60_vm0, %v58_v24, %v55_v30 }
  0x46   :  { %v70_v33 = vsel %vm69_vm1, %v67_v27, %v64_v31  ;;  %v71_v34 = vadd.f32 %v61_v32, %v43_v26  }
  0x47   :  { %v72_v35 = vadd.f32 %v70_v33, %v44_v29  }
  0x48   :  { %v255_v38 = vmov %v71_v34  }
  0x49   :  { %v251_v37 = vmov %v72_v35  }
  0x4a LB: > { %v83_v40 = vmax.f32 %v257_v38, %v253_v37  ;;  %v269_v42 = vmov 0.0   ;;  %s78_s1 = sadd.s32 1, %s265_s1   ;;  %s265_s1 = sphi %s309_s1, %s78_s1   ;;  %v261_v39 = vphi %v259_v39, %v260_v39   ;;  %v257_v38 = vphi %v255_v38, %v99_v38   ;;  %v253_v37 = vphi %v251_v37, %v100_v37   ;;  %v249_v36 = vphi %v247_v36, %v98_v36  }
  0x4b   : > { %p75_p2 = scmp.ge.s32.totalorder %s78_s1, 5  }
  0x4c   : > { %84 = vmax.xlane.f32.xlu0 %v83_v40  ;;  %vm101_vm4 = vcmask (%p75_p2), 7168  }
  0xd9   : > { %v85_v41 = vpop.xlane.xlu0 %84 }
  0xda   : > { %vm86_vm2 = vcmp.eq.f32.partialorder %v257_v38, %v85_v41  ;;  %vm87_vm3 = vcmp.eq.f32.partialorder %v253_v37, %v85_v41 }
  0xdb   : > { %v126_v43 = vsel %vm86_vm2, 1.0, %v269_v42  ;;  %v127_v44 = vsel %vm87_vm3, 1.0, %v269_v42  ;;  %v99_v38 = vsel %vm86_vm2, -1e+30, %v257_v38   ;;  %v100_v37 = vsel %vm87_vm3, -1e+30, %v253_v37  }
  0xdc   : > { %v92_v45 = vadd.f32 %v127_v44, %v126_v43 }
  0xde   : > { %93 = vadd.xlane.f32.xlu0 %v92_v45 }
 0x16b   : > { %v94_v46 = vpop.xlane.xlu0 %93 }
 0x16c   : > { %v95_v47 = vmin.f32 %v94_v46, %v249_v36  ;;  %77 = sbr.rel (!%p75_p2) target bundleno = 74 (0x4a), region = 43 }
 0x16e   : > { %v96_v48 = vmul.f32 %v95_v47, %v85_v41  ;;  %v98_v36 = vsub.f32 %v249_v36, %v95_v47  }
 0x170   : > { %v97_v49 = vadd.f32 %v261_v39, %v96_v48  }
 0x172   : > { %v260_v39 = vmov %v97_v49   ;;  %102 = vst.msk [vmem:[%s319_s2] sm:$0xff] (%p75_p2), %vm101_vm4, %v97_v49 }
 0x173   :  { %107 = vsyncpa [#allocation3], 1 }
 0x174   :  { %108 = vsyncpa [#allocation5], 1 }

</bundles_post_ra>
